<compile_context>
chip_gen: v7x
topology: tpu7x:2x2x1
jax: 0.10.0
libtpu: 0.0.40
codegen_flags: <defaults>
</compile_context>

<pallas_src>
import math
import functools

import jax
import jax.numpy as jnp
from jax.experimental import pallas as pl
from jax.experimental.pallas import tpu as pltpu


_NEG_INF = -1e30                       # large finite negative (avoids exp(-inf - -inf) NaNs)

_ROW_CANDS = (512, 256, 128, 64, 32, 16, 8)     # sublane-axis tile candidates
_LANE_CANDS = (512, 256, 128)                   # lane-axis tile candidates


def _vmem_limit_bytes():
    """Scoped-VMEM limit sized per chip generation (v5e/v6e 128 MiB, v7x 64 MiB)."""
    try:
        cap = int(pltpu.get_tpu_info().vmem_capacity_bytes)
        return max(min(cap * 3 // 4, 100 * 1024 * 1024), 32 * 1024 * 1024)
    except Exception:
        return 48 * 1024 * 1024


def _pick(dim, cands, fits=None):
    """Largest candidate dividing `dim` that passes `fits`; smallest divisor as fallback."""
    divisors = [t for t in cands if t <= dim and dim % t == 0]
    for t in divisors:
        if fits is None or fits(t):
            return t
    return divisors[-1] if divisors else dim


# ---------------------------------------------------------------------------
# Kernel A: fused QKV projection  x2 @ [Wq*scale | Wk | Wv]
# rows = B*T flattened; grid = (rows//tr, 3*d_out//tn), both parallel.
# x tile stays VMEM-resident across the inner lane axis; weights re-stream only
# rows/tr times (tr preferred 512).
# ---------------------------------------------------------------------------
def _qkv_proj_kernel(x_ref, w_ref, o_ref):
    o_ref[...] = jnp.dot(x_ref[...], w_ref[...],
                         preferred_element_type=jnp.float32).astype(o_ref.dtype)


def _qkv_projection(x2, w_qkv, vmem_limit):
    rows, d_in = x2.shape
    n3 = w_qkv.shape[1]
    itemsize = x2.dtype.itemsize
    budget = vmem_limit // 2          # headroom for Mosaic internal scratch

    tn = _pick(n3, _LANE_CANDS)

    def fits(tr):                     # double-buffered x + w + out blocks
        return 2 * (tr * d_in + d_in * tn + tr * tn) * itemsize <= budget

    tr = _pick(rows, _ROW_CANDS, fits)
    # TODO(synk): for very large d_in on v7x (64 MiB VMEM), add a K-tiling "arbitrary"
    # grid axis with an f32 accumulator instead of keeping d_in untiled.

    grid = (rows // tr, n3 // tn)
    return pl.pallas_call(
        _qkv_proj_kernel,
        out_shape=jax.ShapeDtypeStruct((rows, n3), x2.dtype),
        grid_spec=pltpu.PrefetchScalarGridSpec(
            num_scalar_prefetch=0,
            grid=grid,
            in_specs=[
                pl.BlockSpec((tr, d_in), lambda r, n: (r, 0)),
                pl.BlockSpec((d_in, tn), lambda r, n: (0, n)),
            ],
            out_specs=pl.BlockSpec((tr, tn), lambda r, n: (r, n)),
        ),
        compiler_params=pltpu.CompilerParams(
            dimension_semantics=("parallel", "parallel"),
            vmem_limit_bytes=vmem_limit),
    )(x2, w_qkv)


# ---------------------------------------------------------------------------
# Kernel B: causal flash attention with a lower-triangular KV schedule.
# grid = (B, H, steps) where steps enumerates (qi, ki <= qi) pairs via scalar-prefetch
# index tables -> masked blocks are never fetched or computed.
# ---------------------------------------------------------------------------
def _flash_kernel(qi_ref, ki_ref, q_ref, k_ref, v_ref, o_ref,
                  m_sc, l_sc, acc_sc, *, tq, tk):
    s_id = pl.program_id(2)
    qi = qi_ref[s_id]
    ki = ki_ref[s_id]

    @pl.when(ki == 0)
    def _init():
        m_sc[...] = jnp.full_like(m_sc, _NEG_INF)
        l_sc[...] = jnp.zeros_like(l_sc)
        acc_sc[...] = jnp.zeros_like(acc_sc)

    q = q_ref[0, 0]                                   # (tq, hd)  input dtype
    k = k_ref[0, 0]                                   # (tk, hd)
    v = v_ref[0, 0]                                   # (tk, hd)

    # NT matmul: contract the hd axes directly, no transpose of the K tile.
    # 1/sqrt(head_dim) is already folded into W_query.
    s = jax.lax.dot_general(q, k, (((1,), (1,)), ((), ())),
                            preferred_element_type=jnp.float32)           # (tq, tk) f32

    # With tq == tk and identical tile offsets only the diagonal block is partially
    # masked; off-diagonal (ki < qi) blocks are fully visible.
    row = jax.lax.broadcasted_iota(jnp.int32, (tq, tk), 0)
    col = jax.lax.broadcasted_iota(jnp.int32, (tq, tk), 1)
    s = jnp.where((qi == ki) & (col > row), _NEG_INF, s)

    m_prev = m_sc[...]
    m_new = jnp.maximum(m_prev, jnp.max(s, axis=-1, keepdims=True))
    alpha = jnp.exp(m_prev - m_new)
    p = jnp.exp(s - m_new)
    l_sc[...] = alpha * l_sc[...] + jnp.sum(p, axis=-1, keepdims=True)
    acc_sc[...] = alpha * acc_sc[...] + jnp.dot(
        p.astype(v.dtype), v, preferred_element_type=jnp.float32)
    m_sc[...] = m_new

    # The diagonal block is always the last scheduled kv block for this q tile.
    @pl.when(ki == qi)
    def _finalize():
        approx = o_ref.dtype != jnp.float32            # exact for f32 outputs (test tol)
        inv_l = pl.reciprocal(l_sc[...], approx=approx)
        o_ref[0, 0] = (acc_sc[...] * inv_l).astype(o_ref.dtype)

    # TODO(synk): training-mode dropout on attention weights (p>0) not implemented.


def _flash_attention(q, k, v, vmem_limit):
    B, H, T, hd = q.shape
    itemsize = q.dtype.itemsize
    budget = vmem_limit // 2

    def fits(t):
        # double-buffered q/k/v/out blocks + f32 acc scratch + (t,t) f32 intermediates
        return (8 * t * hd * itemsize + t * hd * 4 + 4 * t * t * 4) <= budget

    # tq == tk keeps the triangular schedule and diagonal masking simple.
    tq = tk = _pick(T, _ROW_CANDS, fits)
    nq = T // tq

    # Lower-triangular (qi, ki) enumeration; ki ascending inside each qi.
    qi_l, ki_l = [], []
    for i in range(nq):
        for j in range(i + 1):
            qi_l.append(i)
            ki_l.append(j)
    qi_map = jnp.asarray(qi_l, dtype=jnp.int32)
    ki_map = jnp.asarray(ki_l, dtype=jnp.int32)
    steps = len(qi_l)

    kernel = functools.partial(_flash_kernel, tq=tq, tk=tk)
    return pl.pallas_call(
        kernel,
        out_shape=jax.ShapeDtypeStruct((B, H, T, hd), q.dtype),
        grid_spec=pltpu.PrefetchScalarGridSpec(
            num_scalar_prefetch=2,
            grid=(B, H, steps),
            in_specs=[
                pl.BlockSpec((1, 1, tq, hd),
                             lambda b, h, s, qi_m, ki_m: (b, h, qi_m[s], 0)),
                pl.BlockSpec((1, 1, tk, hd),
                             lambda b, h, s, qi_m, ki_m: (b, h, ki_m[s], 0)),
                pl.BlockSpec((1, 1, tk, hd),
                             lambda b, h, s, qi_m, ki_m: (b, h, ki_m[s], 0)),
            ],
            out_specs=pl.BlockSpec((1, 1, tq, hd),
                                   lambda b, h, s, qi_m, ki_m: (b, h, qi_m[s], 0)),
            scratch_shapes=[
                pltpu.VMEM((tq, 1), jnp.float32),      # running max m
                pltpu.VMEM((tq, 1), jnp.float32),      # running denom l
                pltpu.VMEM((tq, hd), jnp.float32),     # output accumulator
            ]),
        compiler_params=pltpu.CompilerParams(
            dimension_semantics=("parallel", "parallel", "arbitrary"),
            vmem_limit_bytes=vmem_limit),
    )(qi_map, ki_map, q, k, v)


# ---------------------------------------------------------------------------
# Kernel C: output projection as a head-wise reduction:
#   out[b, t, :] = bias + sum_h ctx[b, h, t, :] @ Wo[h]
# grid = (B, T-tiles, H); H is the "arbitrary" reduction axis.
# Wo is kept fully VMEM-resident (one HBM read per call) when it fits.
# ---------------------------------------------------------------------------
def _out_proj_kernel(ctx_ref, wo_ref, bo_ref, o_ref, acc_sc, *, wo_resident):
    h = pl.program_id(2)

    @pl.when(h == 0)
    def _init():
        acc_sc[...] = jnp.broadcast_to(bo_ref[...].astype(jnp.float32), acc_sc.shape)

    w = wo_ref[h] if wo_resident else wo_ref[0]
    acc_sc[...] += jnp.dot(ctx_ref[0, 0], w, preferred_element_type=jnp.float32)

    @pl.when(h == pl.num_programs(2) - 1)
    def _finalize():
        o_ref[0] = acc_sc[...].astype(o_ref.dtype)


def _out_projection(ctx, wo_r, bo2, vmem_limit):
    B, H, T, hd = ctx.shape
    d_out = wo_r.shape[-1]
    itemsize = ctx.dtype.itemsize
    budget = vmem_limit // 2

    wo_bytes = H * hd * d_out * wo_r.dtype.itemsize
    wo_resident = 2 * wo_bytes <= budget // 2

    def fits(t):
        per_step = 2 * (t * hd + t * d_out) * itemsize + t * d_out * 4
        wo_cost = 2 * wo_bytes if wo_resident else 2 * hd * d_out * wo_r.dtype.itemsize
        return per_step + wo_cost <= budget

    tt = _pick(T, _ROW_CANDS, fits)

    if wo_resident:
        wo_spec = pl.BlockSpec((H, hd, d_out), lambda b, ti, h: (0, 0, 0))
    else:
        wo_spec = pl.BlockSpec((1, hd, d_out), lambda b, ti, h: (h, 0, 0))

    kernel = functools.partial(_out_proj_kernel, wo_resident=wo_resident)
    return pl.pallas_call(
        kernel,
        out_shape=jax.ShapeDtypeStruct((B, T, d_out), ctx.dtype),
        grid_spec=pltpu.PrefetchScalarGridSpec(
            num_scalar_prefetch=0,
            grid=(B, T // tt, H),
            in_specs=[
                pl.BlockSpec((1, 1, tt, hd), lambda b, ti, h: (b, h, ti, 0)),
                wo_spec,
                pl.BlockSpec((1, d_out), lambda b, ti, h: (0, 0)),
            ],
            out_specs=pl.BlockSpec((1, tt, d_out), lambda b, ti, h: (b, ti, 0)),
            scratch_shapes=[pltpu.VMEM((tt, d_out), jnp.float32)]),
        compiler_params=pltpu.CompilerParams(
            dimension_semantics=("parallel", "parallel", "arbitrary"),
            vmem_limit_bytes=vmem_limit),
    )(ctx, wo_r, bo2)


# ---------------------------------------------------------------------------
# Full forward (matches PyTorch MultiHeadAttention.forward with dropout p=0)
# ---------------------------------------------------------------------------
def multi_head_attention(x, wq, wk, wv, wo, bo, *, num_heads):
    B, T, d_in = x.shape
    d_out = wq.shape[1]
    hd = d_out // num_heads
    dtype = x.dtype
    scale = 1.0 / math.sqrt(hd)
    vmem_limit = _vmem_limit_bytes()

    # Weight prep (fold softmax scale into W_query, fuse QKV). Under jit with fixed
    # weights these fold to constants; otherwise hoist/precompute once per model.
    w_qkv = jnp.concatenate([wq * scale, wk, wv], axis=1).astype(dtype)   # (d_in, 3*d_out)
    wo_r = wo.reshape(num_heads, hd, d_out).astype(dtype)                 # (H, hd, d_out)
    bo2 = bo.reshape(1, d_out).astype(dtype)

    # Flatten rows so projection tiles are not capped by per-batch boundaries.
    x2 = x.reshape(B * T, d_in)                                           # free reshape
    qkv = _qkv_projection(x2, w_qkv, vmem_limit)                          # (B*T, 3*d_out)

    # Head split is wrapper-level layout plumbing (keeps kernels free of XLU transposes).
    # TODO(synk): fold this relayout into kernel A's output BlockSpec without shrinking
    # its matmul N-dim below the 256-wide MXU (head-major layouts force N = head_dim).
    q, k, v = jnp.split(qkv.reshape(B, T, 3 * d_out), 3, axis=-1)

    def to_heads(t):
        return t.reshape(B, T, num_heads, hd).transpose(0, 2, 1, 3)       # (B, H, T, hd)

    ctx = _flash_attention(to_heads(q), to_heads(k), to_heads(v), vmem_limit)
    return _out_projection(ctx, wo_r, bo2, vmem_limit)                    # (B, T, d_out)


# ---------------------------------------------------------------------------
# Pure-JAX reference (mirrors the PyTorch forward, dropout p=0)
# ---------------------------------------------------------------------------
def reference_mha(x, wq, wk, wv, wo, bo, *, num_heads):
    B, T, d_in = x.shape
    d_out = wq.shape[1]
    head_dim = d_out // num_heads
    q = x @ wq
    k = x @ wk
    v = x @ wv
    q = q.reshape(B, T, num_heads, head_dim).transpose(0, 2, 1, 3)
    k = k.reshape(B, T, num_heads, head_dim).transpose(0, 2, 1, 3)
    v = v.reshape(B, T, num_heads, head_dim).transpose(0, 2, 1, 3)
    scores = jnp.einsum('bhtd,bhsd->bhts', q, k)
    mask = jnp.triu(jnp.ones((T, T), dtype=bool), k=1)
    scores = jnp.where(mask[None, None], -jnp.inf, scores)
    attn = jax.nn.softmax(scores / math.sqrt(head_dim), axis=-1)
    ctx = jnp.einsum('bhts,bhsd->bhtd', attn, v)
    ctx = ctx.transpose(0, 2, 1, 3).reshape(B, T, d_out)
    return ctx @ wo + bo[None, None, :]


if __name__ == "__main__":
    # Small shapes consistent with the module's forward.
    B, T, d_in, d_out, num_heads = 2, 8, 32, 32, 4

    key = jax.random.PRNGKey(0)
    kx, k1, k2, k3, k4, k5 = jax.random.split(key, 6)

    x = jax.random.normal(kx, (B, T, d_in), dtype=jnp.float32)
    # Weights stored as (in_features, out_features); qkv_bias=False, out_proj has bias.
    wq = jax.random.normal(k1, (d_in, d_out), dtype=jnp.float32) * 0.1
    wk = jax.random.normal(k2, (d_in, d_out), dtype=jnp.float32) * 0.1
    wv = jax.random.normal(k3, (d_in, d_out), dtype=jnp.float32) * 0.1
    wo = jax.random.normal(k4, (d_out, d_out), dtype=jnp.float32) * 0.1
    bo = jax.random.normal(k5, (d_out,), dtype=jnp.float32) * 0.1

    out = multi_head_attention(x, wq, wk, wv, wo, bo, num_heads=num_heads)
    out = jax.block_until_ready(out)

    ref = reference_mha(x, wq, wk, wv, wo, bo, num_heads=num_heads)
    assert out.shape == (B, T, d_out)
    assert jnp.allclose(out, ref, atol=1e-4, rtol=1e-4), "mismatch vs reference"

    print("KERNEL_OK")
</pallas_src>

<mosaic_0001>
module attributes {stable_mosaic.version = 11 : i64} {
  func.func @_qkv_proj_kernel(%arg0: i32, %arg1: i32, %arg2: memref<16x32xf32, #tpu.memory_space<vmem>>, %arg3: memref<32x96xf32, #tpu.memory_space<vmem>>, %arg4: memref<16x96xf32, #tpu.memory_space<vmem>>) attributes {dimension_semantics = [#tpu.dimension_semantics<parallel>, #tpu.dimension_semantics<parallel>], iteration_bounds = array<i64: 1, 1>, scalar_prefetch = 0 : i64, scratch_operands = 0 : i64, tpu.core_type = #tpu.core_type<tc>, window_params = [{transform_indices = @transform_0, window_bounds = array<i64: 16, 32>}, {transform_indices = @transform_1, window_bounds = array<i64: 32, 96>}, {transform_indices = @transform_2, window_bounds = array<i64: 16, 96>}]} {
    %c0 = arith.constant 0 : index
    %c0_0 = arith.constant 0 : index
    %0 = vector.load %arg2[%c0, %c0_0] : memref<16x32xf32, #tpu.memory_space<vmem>>, vector<16x32xf32>
    %c0_1 = arith.constant 0 : index
    %c0_2 = arith.constant 0 : index
    %1 = vector.load %arg3[%c0_1, %c0_2] : memref<32x96xf32, #tpu.memory_space<vmem>>, vector<32x96xf32>
    %cst = arith.constant dense<0.000000e+00> : vector<16x96xf32>
    %2 = tpu.matmul %0, %1, %cst {dimension_numbers = #tpu.dot_dimension_numbers<[1], [0], [0], [1], [0, 0, 1, 1], [], []>} : vector<16x32xf32>, vector<32x96xf32>, vector<16x96xf32> -> vector<16x96xf32>
    %c0_3 = arith.constant 0 : index
    %c0_4 = arith.constant 0 : index
    %3 = vector.load %arg4[%c0_3, %c0_4] : memref<16x96xf32, #tpu.memory_space<vmem>>, vector<16x96xf32>
    tpu.vector_store %arg4[%c0_3, %c0_4], %2 {strides = array<i32>} : memref<16x96xf32, #tpu.memory_space<vmem>>, vector<16x96xf32>,
    return
  }
  func.func @transform_0(%arg0: i32, %arg1: i32) -> (i32, i32) {
    %c0_i32 = arith.constant 0 : i32
    %c0_i32_0 = arith.constant 0 : i32
    return %arg0, %c0_i32 : i32, i32
  }
  func.func @transform_1(%arg0: i32, %arg1: i32) -> (i32, i32) {
    %c0_i32 = arith.constant 0 : i32
    %c0_i32_0 = arith.constant 0 : i32
    return %c0_i32, %arg1 : i32, i32
  }
  func.func @transform_2(%arg0: i32, %arg1: i32) -> (i32, i32) {
    %c0_i32 = arith.constant 0 : i32
    return %arg0, %arg1 : i32, i32
  }
}

</mosaic_0001>

<bundles_post_ra>
// kernel: tpu_custom_call.1
= control target key start
LH: loop header
LB: loop body
LE: loop exit
PB: predicated region body
PF: predicated region fallthrough
CT: control target
= control target key end

     0   :  { %7 = vsyncpa [#allocation3], 0  ;;  %s318_s0 = inlined_call_operand.hbm [shape: f32[16,32], index: 0, kind: input, shape index: {}]   ;;  %s319_s1 = inlined_call_operand.hbm [shape: f32[32,96], index: 1, kind: input, shape index: {}]   ;;  %s320_s2 = inlined_call_operand.hbm [shape: f32[16,96], index: 2, kind: output, shape index: {}]  }
   0x1   :  { %8 = vsyncpa [#allocation6], 0 }
   0x2   :  { %9 = vsyncpa [#allocation4], 0  ;;  %s253_s9 = smov [#allocation2]   ;;  %s181_s13 = scalar_lea.hbm %s318_s0, 256 }
   0x3   :  { %s15_s10 = sshll.u32 %s253_s9, 4  ;;  %p182_p0 = scmp.ne.s32.totalorder %s318_s0, %s181_s13  ;;  %s16_s10 = int_to_ptr.vmem [resolvable:$true] %s15_s10 }
   0x4   :  { %p185_p1 = scmp.lt.u32.totalorder %s181_s13, %s318_s0 }
   0x6   :  { %p187_p2 = pnand %p185_p1, %p182_p0 }
   0x8   :  { %190 = shalt.err (!%p187_p2)
}
   0x9   :  { %s191_s18 = scalar_lea.vmem %s16_s10, 256  ;;  %p196_p4 = scmp.lt.s32.totalorder %s16_s10, %s16_s10 }
   0xa   :  { %p192_p3 = scmp.ne.s32.totalorder %s16_s10, %s191_s18  ;;  %p197_p5 = scmp.lt.s32.totalorder %s191_s18, %s191_s18 }
   0xc   :  { %p198_p6 = por %p197_p5, %p196_p4 }
   0xe   :  { %p199_p7 = pnand %p198_p6, %p192_p3 }
  0x10   :  { %202 = shalt.err (!%p199_p7)
}
  0x11   :  { %s254_s19 = smov 128   ;;  %s255_s20 = smov 8  }
  0x12   :  { %21 = dma.hbm_to_vmem [thread:$0]  %s318_s0, 256, %s16_s10, [#allocation3], %s254_s19, %s254_s19, %s255_s20  }
  0x13   :  { %s256_s23 = smov [#allocation5]   ;;  %s203_s27 = scalar_lea.hbm %s319_s1, 512 }
  0x14   :  { %s27_s24 = sshll.u32 %s256_s23, 4  ;;  %p204_p8 = scmp.ne.s32.totalorder %s319_s1, %s203_s27  ;;  %s28_s24 = int_to_ptr.vmem [resolvable:$true] %s27_s24 }
  0x15   :  { %p207_p9 = scmp.lt.u32.totalorder %s203_s27, %s319_s1 }
  0x17   :  { %p209_p10 = pnand %p207_p9, %p204_p8 }
  0x19   :  { %212 = shalt.err (!%p209_p10)
}
  0x1a   :  { %s213_s4 = scalar_lea.vmem %s28_s24, 512  ;;  %p218_p12 = scmp.lt.s32.totalorder %s28_s24, %s28_s24 }
  0x1b   :  { %p214_p11 = scmp.ne.s32.totalorder %s28_s24, %s213_s4  ;;  %p219_p13 = scmp.lt.s32.totalorder %s213_s4, %s213_s4 }
  0x1d   :  { %p220_p0 = por %p219_p13, %p218_p12 }
  0x1f   :  { %p221_p1 = pnand %p220_p0, %p214_p11 }
  0x21   :  { %224 = shalt.err (!%p221_p1)
}
  0x22   :  { %33 = dma.hbm_to_vmem [thread:$0]  %s319_s1, 512, %s28_s24, [#allocation6], %s254_s19, %s254_s19, %s255_s20  }
  0x23   :  { %247 = dma.done.wait [#allocation3], 256  }
  0x24   :  { %248 = vsyncadd [#allocation3], 4294967040 }
  0x25   :  { %249 = dma.done.wait [#allocation6], 512  }
  0x26   :  { %250 = vsyncadd [#allocation6], 4294966784  ;;  %vm46_vm0 = vcmask 261120   ;;  %v42_v0 = vld [vmem:[#allocation5] sm:$0xff]  ;;  %v43_v1 = vld [vmem:[#allocation5 + $0x8] sm:$0xff]  ;;  %s257_s1 = smov [#allocation7]  }
  0x27   :  { %v44_v2 = vld [vmem:[#allocation5 + $0x10] sm:$0xff]  ;;  %v168_v3 = vpack.c.bf16 %v43_v1, %v42_v0  ;;  %v45_v4 = vld [vmem:[#allocation5 + $0x18] sm:$0xff]  ;;  %s136_s6 = sshll.u32 %s257_s1, 4  ;;  %vm128_vm1 = vcmask 785408   ;;  %s137_s6 = int_to_ptr.vmem [resolvable:$true] %s136_s6 }
  0x28   :  { %v40_v5 = vld [vmem:[#allocation2] sm:$0xff]  ;;  %v172_v6 = vpack.c.bf16 %v45_v4, %v44_v2  ;;  %v41_v7 = vld [vmem:[#allocation2 + $0x8] sm:$0xff]  ;;  %s225_s7 = scalar_lea.vmem %s137_s6, 256  ;;  %p230_p3 = scmp.lt.s32.totalorder %s137_s6, %s137_s6 }
  0x29   :  { %165 = vmatprep.mubr.msk.f32.mxu0 %vm46_vm0, %v40_v5  ;;  %169 = vmatprep.subr.bf16.mxu0 %v168_v3  ;;  %p226_p2 = scmp.ne.s32.totalorder %s137_s6, %s225_s7  ;;  %p231_p4 = scmp.lt.s32.totalorder %s225_s7, %s225_s7 }
  0x2a   :  { %171 = vmatpush3.bf16.msra.mxu0 %v168_v3 }
  0x2b   :  { %173 = vmatprep.subr.bf16.mxu0 %v172_v6  ;;  %p232_p5 = por %p231_p4, %p230_p3 }
  0x2d   :  { %p233_p6 = pnand %p232_p5, %p226_p2 }
  0x2e   :  { %175 = vmatpush3.bf16.msra.mxu0 %v172_v6 }
  0x31   :  { %166 = vmatmul.mubr.msk.f32.vlgmr.msra.gmra.mrb[0].mxu0 %vm46_vm0, %v41_v7 }
 0x104   :  { %v167_v8 = vpop.f32.mrb[0].mxu0 }
 0x105   :  { %130 = vst.msk [vmem:[#allocation7 + $0x8] sm:$0xff] %vm128_vm1, %v167_v8  ;;  %v119_v9 = vpop.f32.mrb[1].mxu0 }
 0x106   :  { %129 = vst.msk [vmem:[#allocation7] sm:$0xff] %vm128_vm1, %v119_v9 }
 0x107   :  { %236 = shalt.err (!%p233_p6)
}
 0x108   :  { %s237_s10 = scalar_lea.hbm %s320_s2, 256 }
 0x109   :  { %p238_p7 = scmp.ne.s32.totalorder %s320_s2, %s237_s10  ;;  %p241_p8 = scmp.lt.u32.totalorder %s237_s10, %s320_s2 }
 0x10b   :  { %p243_p9 = pnand %p241_p8, %p238_p7 }
 0x10d   :  { %246 = shalt.err (!%p243_p9)
}
 0x10e   :  { %142 = dma.vmem_to_hbm [thread:$0]  %s137_s6, 256, %s320_s2, [#allocation4], %s254_s19, %s254_s19, %s255_s20  }
 0x10f   :  { %251 = dma.done.wait [#allocation4], 256  }
 0x110   :  { %252 = vsyncadd [#allocation4], 4294967040 }
 0x111   :  { %146 = vsyncpa [#allocation3], 1 }
 0x112   :  { %147 = vsyncpa [#allocation6], 1 }
 0x113   :  { %148 = vsyncpa [#allocation4], 1 }

</bundles_post_ra>
